<compile_context>
chip_gen: v5e
topology: v5e:2x2
jax: 0.10.0
libtpu: 0.0.40
codegen_flags: <defaults>
</compile_context>

<pallas_src>
import jax
import jax.numpy as jnp
from jax.experimental import pallas as pl
from jax.experimental.pallas import tpu as pltpu  # noqa: F401  (TPU backend)


# ---------------------------------------------------------------------------
# Kernels
# ---------------------------------------------------------------------------
def _embed(x, w1, b1, w2, b2):
    # x: (B, D) f32; w1: (D, H) bf16; b1: (1, H) f32; w2: (H, E) bf16; b2: (1, E) f32
    h = jnp.dot(x.astype(jnp.bfloat16), w1, preferred_element_type=jnp.float32)
    h = jnp.maximum(h + b1, 0.0)                     # bias + ReLU in f32 (VPU)
    out = jnp.dot(h.astype(jnp.bfloat16), w2, preferred_element_type=jnp.float32)
    return out + b2


def _siamese_kernel(x1_ref, x2_ref, w1_ref, b1_ref, w2_ref, b2_ref,
                    o1_ref, o2_ref):
    w1 = w1_ref[...]
    b1 = b1_ref[...]
    w2 = w2_ref[...]
    b2 = b2_ref[...]
    o1_ref[...] = _embed(x1_ref[...], w1, b1, w2, b2).astype(o1_ref.dtype)
    o2_ref[...] = _embed(x2_ref[...], w1, b1, w2, b2).astype(o2_ref.dtype)


def _single_kernel(x_ref, w1_ref, b1_ref, w2_ref, b2_ref, o_ref):
    o_ref[...] = _embed(x_ref[...], w1_ref[...], b1_ref[...],
                        w2_ref[...], b2_ref[...]).astype(o_ref.dtype)


# ---------------------------------------------------------------------------
# Wrappers
# ---------------------------------------------------------------------------
def prepare_params(params):
    """One-time prep of the shared embedding-net params for the kernel.

    Casts weights to bf16 (MXU operands) and reshapes biases to (1, N) f32.
    Call once and reuse; keeps per-forward wrapper HLO count at zero.
    """
    w1, b1, w2, b2 = params
    return (w1.astype(jnp.bfloat16),
            b1.reshape(1, -1).astype(jnp.float32),
            w2.astype(jnp.bfloat16),
            b2.reshape(1, -1).astype(jnp.float32))


def _full_spec(shape):
    # Grid-less full-extent block (legal even when not (8,128)-divisible).
    return pl.BlockSpec(shape, lambda: (0,) * len(shape))


def siamese_forward(x1, x2, prepped_params):
    """Shared-weight siamese forward. Returns (output1, output2), each (B, E)."""
    w1, b1, w2, b2 = prepped_params
    B, D = x1.shape
    H = w1.shape[1]
    E = w2.shape[1]

    out1, out2 = pl.pallas_call(
        _siamese_kernel,
        out_shape=(jax.ShapeDtypeStruct((B, E), jnp.float32),
                   jax.ShapeDtypeStruct((B, E), jnp.float32)),
        in_specs=[
            _full_spec((B, D)),   # x1
            _full_spec((B, D)),   # x2
            _full_spec((D, H)),   # W1 (shared)
            _full_spec((1, H)),   # b1 (shared)
            _full_spec((H, E)),   # W2 (shared)
            _full_spec((1, E)),   # b2 (shared)
        ],
        out_specs=(_full_spec((B, E)), _full_spec((B, E))),
    )(x1, x2, w1, b1, w2, b2)
    return out1, out2


def get_embedding(x, prepped_params):
    """Mirror of SiameseNet.get_embedding: single-branch path (no 2x work)."""
    w1, b1, w2, b2 = prepped_params
    B, D = x.shape
    H = w1.shape[1]
    E = w2.shape[1]

    return pl.pallas_call(
        _single_kernel,
        out_shape=jax.ShapeDtypeStruct((B, E), jnp.float32),
        in_specs=[
            _full_spec((B, D)),
            _full_spec((D, H)),
            _full_spec((1, H)),
            _full_spec((H, E)),
            _full_spec((1, E)),
        ],
        out_specs=_full_spec((B, E)),
    )(x, w1, b1, w2, b2)


# ---------------------------------------------------------------------------
# Pure-JAX reference mirroring the kernel numerics (bf16 MXU, f32 accumulate)
# ---------------------------------------------------------------------------
def _reference_embed(x, params):
    w1, b1, w2, b2 = params
    h = jnp.dot(x.astype(jnp.bfloat16), w1.astype(jnp.bfloat16),
                preferred_element_type=jnp.float32) + b1
    h = jnp.maximum(h, 0.0)
    return jnp.dot(h.astype(jnp.bfloat16), w2.astype(jnp.bfloat16),
                   preferred_element_type=jnp.float32) + b2


if __name__ == "__main__":
    # Small shapes consistent with an MLP embedding net.
    B, D, H, E = 8, 64, 128, 32

    key = jax.random.PRNGKey(0)
    k_x1, k_x2, k_w1, k_b1, k_w2, k_b2 = jax.random.split(key, 6)

    x1 = jax.random.normal(k_x1, (B, D), dtype=jnp.float32)
    x2 = jax.random.normal(k_x2, (B, D), dtype=jnp.float32)

    # Deterministic synthetic parameters for the shared embedding net.
    w1 = jax.random.normal(k_w1, (D, H), dtype=jnp.float32) * 0.1
    b1 = jax.random.normal(k_b1, (H,), dtype=jnp.float32) * 0.1
    w2 = jax.random.normal(k_w2, (H, E), dtype=jnp.float32) * 0.1
    b2 = jax.random.normal(k_b2, (E,), dtype=jnp.float32) * 0.1
    params = (w1, b1, w2, b2)

    # One-time param prep (hoisted out of the per-call forward).
    prepped = prepare_params(params)

    out1, out2 = siamese_forward(x1, x2, prepped)
    out1, out2 = jax.block_until_ready((out1, out2))

    emb = jax.block_until_ready(get_embedding(x1, prepped))

    ref1 = _reference_embed(x1, params)
    ref2 = _reference_embed(x2, params)
    assert out1.shape == (B, E) and out2.shape == (B, E)
    assert emb.shape == (B, E)
    assert jnp.allclose(out1, ref1, atol=2e-2, rtol=2e-2)
    assert jnp.allclose(out2, ref2, atol=2e-2, rtol=2e-2)
    assert jnp.allclose(emb, ref1, atol=2e-2, rtol=2e-2)

    print("KERNEL_OK")
</pallas_src>

<mosaic_0001>
module attributes {stable_mosaic.version = 11 : i64} {
  func.func @_siamese_kernel(%arg0: memref<8x64xf32, #tpu.memory_space<vmem>>, %arg1: memref<8x64xf32, #tpu.memory_space<vmem>>, %arg2: memref<64x128xbf16, #tpu.memory_space<vmem>>, %arg3: memref<1x128xf32, #tpu.memory_space<vmem>>, %arg4: memref<128x32xbf16, #tpu.memory_space<vmem>>, %arg5: memref<1x32xf32, #tpu.memory_space<vmem>>, %arg6: memref<8x32xf32, #tpu.memory_space<vmem>>, %arg7: memref<8x32xf32, #tpu.memory_space<vmem>>) attributes {dimension_semantics = [], scalar_prefetch = 0 : i64, scratch_operands = 0 : i64, tpu.core_type = #tpu.core_type<tc>} {
    %c0 = arith.constant 0 : index
    %c0_0 = arith.constant 0 : index
    %0 = vector.load %arg2[%c0, %c0_0] : memref<64x128xbf16, #tpu.memory_space<vmem>>, vector<64x128xbf16>
    %c0_1 = arith.constant 0 : index
    %c0_2 = arith.constant 0 : index
    %1 = vector.load %arg3[%c0_1, %c0_2] : memref<1x128xf32, #tpu.memory_space<vmem>>, vector<1x128xf32>
    %c0_3 = arith.constant 0 : index
    %c0_4 = arith.constant 0 : index
    %2 = vector.load %arg4[%c0_3, %c0_4] : memref<128x32xbf16, #tpu.memory_space<vmem>>, vector<128x32xbf16>
    %c0_5 = arith.constant 0 : index
    %c0_6 = arith.constant 0 : index
    %3 = vector.load %arg5[%c0_5, %c0_6] : memref<1x32xf32, #tpu.memory_space<vmem>>, vector<1x32xf32>
    %c0_7 = arith.constant 0 : index
    %c0_8 = arith.constant 0 : index
    %4 = vector.load %arg0[%c0_7, %c0_8] : memref<8x64xf32, #tpu.memory_space<vmem>>, vector<8x64xf32>
    %5 = arith.truncf %4 : vector<8x64xf32> to vector<8x64xbf16>
    %cst = arith.constant dense<0.000000e+00> : vector<8x128xf32>
    %6 = tpu.matmul %5, %0, %cst {dimension_numbers = #tpu.dot_dimension_numbers<[1], [0], [0], [1], [0, 0, 1, 1], [], []>} : vector<8x64xbf16>, vector<64x128xbf16>, vector<8x128xf32> -> vector<8x128xf32>
    %7 = vector.broadcast %1 : vector<1x128xf32> to vector<8x128xf32>
    %8 = arith.addf %6, %7 : vector<8x128xf32>
    %cst_9 = arith.constant 0.000000e+00 : f32
    %9 = vector.broadcast %cst_9 : f32 to vector<8x128xf32>
    %10 = arith.maximumf %8, %9 : vector<8x128xf32>
    %11 = arith.truncf %10 : vector<8x128xf32> to vector<8x128xbf16>
    %cst_10 = arith.constant dense<0.000000e+00> : vector<8x32xf32>
    %12 = tpu.matmul %11, %2, %cst_10 {dimension_numbers = #tpu.dot_dimension_numbers<[1], [0], [0], [1], [0, 0, 1, 1], [], []>} : vector<8x128xbf16>, vector<128x32xbf16>, vector<8x32xf32> -> vector<8x32xf32>
    %13 = vector.broadcast %3 : vector<1x32xf32> to vector<8x32xf32>
    %14 = arith.addf %12, %13 : vector<8x32xf32>
    %c0_11 = arith.constant 0 : index
    %c0_12 = arith.constant 0 : index
    %15 = vector.load %arg6[%c0_11, %c0_12] : memref<8x32xf32, #tpu.memory_space<vmem>>, vector<8x32xf32>
    tpu.vector_store %arg6[%c0_11, %c0_12], %14 {strides = array<i32>} : memref<8x32xf32, #tpu.memory_space<vmem>>, vector<8x32xf32>,
    %c0_13 = arith.constant 0 : index
    %c0_14 = arith.constant 0 : index
    %16 = vector.load %arg1[%c0_13, %c0_14] : memref<8x64xf32, #tpu.memory_space<vmem>>, vector<8x64xf32>
    %17 = arith.truncf %16 : vector<8x64xf32> to vector<8x64xbf16>
    %cst_15 = arith.constant dense<0.000000e+00> : vector<8x128xf32>
    %18 = tpu.matmul %17, %0, %cst_15 {dimension_numbers = #tpu.dot_dimension_numbers<[1], [0], [0], [1], [0, 0, 1, 1], [], []>} : vector<8x64xbf16>, vector<64x128xbf16>, vector<8x128xf32> -> vector<8x128xf32>
    %19 = vector.broadcast %1 : vector<1x128xf32> to vector<8x128xf32>
    %20 = arith.addf %18, %19 : vector<8x128xf32>
    %cst_16 = arith.constant 0.000000e+00 : f32
    %21 = vector.broadcast %cst_16 : f32 to vector<8x128xf32>
    %22 = arith.maximumf %20, %21 : vector<8x128xf32>
    %23 = arith.truncf %22 : vector<8x128xf32> to vector<8x128xbf16>
    %cst_17 = arith.constant dense<0.000000e+00> : vector<8x32xf32>
    %24 = tpu.matmul %23, %2, %cst_17 {dimension_numbers = #tpu.dot_dimension_numbers<[1], [0], [0], [1], [0, 0, 1, 1], [], []>} : vector<8x128xbf16>, vector<128x32xbf16>, vector<8x32xf32> -> vector<8x32xf32>
    %25 = vector.broadcast %3 : vector<1x32xf32> to vector<8x32xf32>
    %26 = arith.addf %24, %25 : vector<8x32xf32>
    %c0_18 = arith.constant 0 : index
    %c0_19 = arith.constant 0 : index
    %27 = vector.load %arg7[%c0_18, %c0_19] : memref<8x32xf32, #tpu.memory_space<vmem>>, vector<8x32xf32>
    tpu.vector_store %arg7[%c0_18, %c0_19], %26 {strides = array<i32>} : memref<8x32xf32, #tpu.memory_space<vmem>>, vector<8x32xf32>,
    return
  }
}

</mosaic_0001>

<bundles_post_ra>
// kernel: tpu_custom_call.1
= control target key start
LH: loop header
LB: loop body
LE: loop exit
PB: predicated region body
PF: predicated region fallthrough
CT: control target
= control target key end

     0   :  { %13 = vsyncpa [#allocation3], 0  ;;  %s448_s0 = inlined_call_operand.vmem [shape: f32[8,64], index: 0, kind: input, shape index: {}]   ;;  %s449_s1 = inlined_call_operand.vmem [shape: f32[8,64], index: 1, kind: input, shape index: {}]   ;;  %s450_s2 = inlined_call_operand.vmem [shape: bf16[64,128], index: 2, kind: input, shape index: {}]   ;;  %s451_s3 = inlined_call_operand.vmem [shape: f32[1,128], index: 3, kind: input, shape index: {}]   ;;  %s452_s4 = inlined_call_operand.vmem [shape: bf16[128,32], index: 4, kind: input, shape index: {}]   ;;  %s453_s5 = inlined_call_operand.vmem [shape: f32[1,32], index: 5, kind: input, shape index: {}]   ;;  %s454_s6 = inlined_call_operand.hbm [shape: f32[8,32], index: 6, kind: output, shape index: {0}]   ;;  %s455_s7 = inlined_call_operand.hbm [shape: f32[8,32], index: 7, kind: output, shape index: {1}]  }
   0x1   :  { %v287_v0 = vld [vmem:[%s450_s2 + $0x18] sm:$0xff]  ;;  %v286_v1 = vld [vmem:[%s450_s2 + $0x10] sm:$0xff] }
   0x2   :  { %177 = vmatpush.bf16.msra.mxu2 %v287_v0  ;;  %91 = vmatpush.bf16.msra.mxu0 %v287_v0  ;;  %v295_v2 = vld [vmem:[%s452_s4 + $0x38] sm:$0xff]  ;;  %v294_v3 = vld [vmem:[%s452_s4 + $0x30] sm:$0xff] }
   0x3   :  { %153 = vmatpush.bf16.msra.mxu1 %v295_v2  ;;  %188 = vmatpush.bf16.msra.mxu3 %v295_v2 }
   0x4   :  { %14 = vsyncpa [#allocation5], 0  ;;  %v285_v4 = vld [vmem:[%s450_s2 + $0x8] sm:$0xff]  ;;  %v284_v6 = vld [vmem:[%s450_s2] sm:$0xff]  ;;  %vm83_vm0 = vcmask 523264   ;;  %s352_s29 = smov [#allocation2]  }
   0x5   :  { %v293_v5 = vld [vmem:[%s452_s4 + $0x28] sm:$0xff]  ;;  %v168_v7 = vld [vmem:[%s449_s1] sm:$0xff]  ;;  %v291_v12 = vld [vmem:[%s452_s4 + $0x18] sm:$0xff]  ;;  %s207_s30 = sshll.u32 %s352_s29, 4  ;;  %s209_s9 = sshll.u32 %s454_s6, 4  ;;  %vm166_vm1 = vcmask 261120   ;;  %s208_s30 = int_to_ptr.vmem [resolvable:$true] %s207_s30  ;;  %s210_s9 = int_to_ptr.hbm [resolvable:$true] %s209_s9 }
   0x6   :  { %178 = vmatpush.bf16.msra.mxu2 %v286_v1  ;;  %92 = vmatpush.bf16.msra.mxu0 %v286_v1  ;;  %v54_v8 = vld [vmem:[%s448_s0] sm:$0xff]  ;;  %v169_v10 = vpack.c.bf16 %v168_v7, %v168_v7  ;;  %v290_v13 = vld [vmem:[%s452_s4 + $0x10] sm:$0xff]  ;;  %v289_v14 = vld [vmem:[%s452_s4 + $0x8] sm:$0xff]  ;;  %s353_s10 = smov [#allocation4]  }
   0x7   :  { %154 = vmatpush.bf16.msra.mxu1 %v294_v3  ;;  %189 = vmatpush.bf16.msra.mxu3 %v294_v3  ;;  %v292_v9 = vld [vmem:[%s452_s4 + $0x20] sm:$0xff]  ;;  %v55_v11 = vpack.c.bf16 %v54_v8, %v54_v8  ;;  %s218_s11 = sshll.u32 %s353_s10, 4  ;;  %s219_s11 = int_to_ptr.vmem [resolvable:$true] %s218_s11 }
   0x8   :  { %v288_v15 = vld [vmem:[%s452_s4] sm:$0xff] }
   0x9   :  { %v298_v16 = vld [vmem:[%s451_s3] ss:$0 sm:$0xff] }
   0xa   :  { %179 = vmatpush.bf16.msra.mxu2 %v285_v4  ;;  %93 = vmatpush.bf16.msra.mxu0 %v285_v4  ;;  %v299_v27 = vld [vmem:[%s453_s5] ss:$0 sm:$0xff]  ;;  %s220_s5 = sshll.u32 %s455_s7, 4  ;;  %s221_s5 = int_to_ptr.hbm [resolvable:$true] %s220_s5 }
   0xb   :  { %155 = vmatpush.bf16.msra.mxu1 %v293_v5  ;;  %190 = vmatpush.bf16.msra.mxu3 %v293_v5 }
   0xe   :  { %180 = vmatpush.bf16.msra.mxu2 %v284_v6  ;;  %94 = vmatpush.bf16.msra.mxu0 %v284_v6 }
   0xf   :  { %156 = vmatpush.bf16.msra.mxu1 %v292_v9  ;;  %191 = vmatpush.bf16.msra.mxu3 %v292_v9 }
  0x11   :  { %283 = vmatmul.msk.bf16.vlgmr.msra.gmra.mxu2 %vm83_vm0, %v169_v10  ;;  %250 = vmatmul.msk.bf16.vlgmr.msra.gmra.mxu0 %vm83_vm0, %v55_v11 }
  0x13   :  { %157 = vmatpush.bf16.msra.mxu1 %v291_v12  ;;  %192 = vmatpush.bf16.msra.mxu3 %v291_v12 }
  0x17   :  { %158 = vmatpush.bf16.msra.mxu1 %v290_v13  ;;  %193 = vmatpush.bf16.msra.mxu3 %v290_v13 }
  0x1b   :  { %159 = vmatpush.bf16.msra.mxu1 %v289_v14  ;;  %194 = vmatpush.bf16.msra.mxu3 %v289_v14 }
  0x1f   :  { %160 = vmatpush.bf16.msra.mxu1 %v288_v15  ;;  %195 = vmatpush.bf16.msra.mxu3 %v288_v15 }
  0x8e   :  { %v96_v17 = vpop.f32.mrf.mxu0 }
  0x8f   :  { %v97_v18 = vadd.f32 %v298_v16, %v96_v17 }
  0x91   :  { %v100_v19 = vmax.f32 %v97_v18, 0.0 }
  0x93   :  { %v101_v20 = vpack.c.bf16 %v100_v19, %v100_v19 }
  0x94   :  { %v182_v21 = vpop.f32.mrf.mxu2 }
  0x95   :  { %v183_v22 = vadd.f32 %v298_v16, %v182_v21  ;;  %161 = vmatmul.bf16.vlgmr.msra.gmra.mxu1 %v101_v20 }
  0x96   :  { %v98_v23 = vpop.f32.mrf.mxu0 }
  0x97   :  { %v186_v24 = vmax.f32 %v183_v22, 0.0 }
  0x99   :  { %v187_v25 = vpack.c.bf16 %v186_v24, %v186_v24 }
  0x9b   :  { %196 = vmatmul.bf16.vlgmr.msra.gmra.mxu3 %v187_v25 }
  0x9c   :  { %v184_v26 = vpop.f32.mrf.mxu2 }
 0x112   :  { %v162_v28 = vpop.f32.mrf.mxu1 }
 0x113   :  { %v163_v29 = vadd.f32 %v299_v27, %v162_v28 }
 0x115   :  { %167 = vst.msk [vmem:[#allocation2] sm:$0xff] %vm166_vm1, %v163_v29 }
 0x116   :  { %212 = dma.vmem_to_hbm [thread:$0]  %s208_s30, 128, %s210_s9, [#allocation3]  }
 0x11a   :  { %v164_v30 = vpop.f32.mrf.mxu1 }
 0x11e   :  { %v197_v31 = vpop.f32.mrf.mxu3 }
 0x11f   :  { %v198_v32 = vadd.f32 %v299_v27, %v197_v31 }
 0x121   :  { %201 = vst.msk [vmem:[#allocation4] sm:$0xff] %vm166_vm1, %v198_v32 }
 0x122   :  { %223 = dma.vmem_to_hbm [thread:$0]  %s219_s11, 128, %s221_s5, [#allocation5]  }
 0x126   :  { %v199_v33 = vpop.f32.mrf.mxu3 }
 0x127   :  { %348 = dma.done.wait [#allocation3], 128  }
 0x128   :  { %349 = vsyncadd [#allocation3], 4294967168 }
 0x129   :  { %350 = dma.done.wait [#allocation5], 128  }
 0x12a   :  { %351 = vsyncadd [#allocation5], 4294967168 }
 0x12b   :  { %232 = vsyncpa [#allocation3], 1 }
 0x12c   :  { %233 = vsyncpa [#allocation5], 1 }

</bundles_post_ra>
